<compile_context>
chip_gen: v5e
topology: v5e:2x2
jax: 0.10.0
libtpu: 0.0.40
codegen_flags: <defaults>
</compile_context>

<pallas_src>
import functools

import jax
import jax.numpy as jnp
from jax import lax
from jax.experimental import pallas as pl
from jax.experimental.pallas import tpu as pltpu
import numpy as np


def _round_up(a, b):
    return (a + b - 1) // b * b


def _best_tile(total, cap, step=8):
    """Largest multiple of `step` <= cap that minimizes padded coverage of `total`."""
    cap = max(step, cap // step * step)
    cap = min(cap, _round_up(total, step))
    best, best_cost = step, None
    t = step
    while t <= cap:
        cost = pl.cdiv(total, t) * t
        if best_cost is None or cost <= best_cost:
            best, best_cost = t, cost
        t += step
    return best


def _vmem_limit_bytes():
    # Generation-aware scoped-VMEM limit (~75% of physical); conservative
    # fallback (48 MiB) is safe on v5e/v6e/v7x.
    try:
        cap = pltpu.get_tpu_info().vmem_capacity_bytes
    except Exception:
        cap = 64 * 1024 * 1024
    return int(cap) * 3 // 4


# --------------------------------------------------------------------------
# Main path: whole planes, channels-major flattened layout (nc, H*W).
# Block = (tc, H*W): contiguous in HBM, lane-dense, no halos needed.
# --------------------------------------------------------------------------
def _flat_laplacian_kernel(x_ref, o_ref, *, H, W):
    x = x_ref[...].astype(jnp.float32)                 # (tc, H*W), f32 accum
    hw = H * W
    idx = lax.broadcasted_iota(jnp.int32, x.shape, 1)  # flattened h*W + w
    acc = -4.0 * x
    if H > 1:
        up = pltpu.roll(x, shift=W, axis=1)            # x[idx - W]
        down = pltpu.roll(x, shift=hw - W, axis=1)     # x[idx + W]
        acc = acc + jnp.where(idx < W, 0.0, up)
        acc = acc + jnp.where(idx >= hw - W, 0.0, down)
    if W > 1:
        if (W & (W - 1)) == 0:                         # cheap mask for pow2 W
            col = idx & (W - 1)
        else:
            col = idx % W
        left = pltpu.roll(x, shift=1, axis=1)          # x[idx - 1]
        right = pltpu.roll(x, shift=hw - 1, axis=1)    # x[idx + 1]
        acc = acc + jnp.where(col == 0, 0.0, left)
        acc = acc + jnp.where(col == W - 1, 0.0, right)
    o_ref[...] = acc.astype(o_ref.dtype)


# --------------------------------------------------------------------------
# Large-plane path: (nc, H, W), row-tiled (1, th, W) contiguous blocks with a
# 1-row halo taken from an 8-row slab (clamped index maps).
# --------------------------------------------------------------------------
def _rows_laplacian_kernel(x_ref, top_ref, bot_ref, o_ref, *, H, W):
    r = pl.program_id(1)
    x = x_ref[...].astype(jnp.float32)                 # (1, th, W)
    th = x.shape[1]
    lrow = lax.broadcasted_iota(jnp.int32, x.shape, 1)  # local row
    grow = lrow + r * th                                # global row

    # Vertical neighbors: sublane roll inside the block, halo rows spliced in.
    top = top_ref[:, 7:8, :].astype(jnp.float32)        # global row r*th - 1
    bot = bot_ref[:, 0:1, :].astype(jnp.float32)        # global row (r+1)*th
    up = pltpu.roll(x, shift=1, axis=1)                 # x[i-1]
    up = jnp.where(lrow == 0, top, up)
    up = jnp.where(grow == 0, 0.0, up)                  # zero padding at top
    down = pltpu.roll(x, shift=th - 1, axis=1)          # x[i+1]
    down = jnp.where(lrow == th - 1, bot, down)
    down = jnp.where(grow >= H - 1, 0.0, down)          # zero padding at bottom
    acc = up + down - 4.0 * x

    # Horizontal neighbors: lane rolls, single-column masks.
    if W > 1:
        col = lax.broadcasted_iota(jnp.int32, x.shape, 2)
        left = pltpu.roll(x, shift=1, axis=2)
        right = pltpu.roll(x, shift=W - 1, axis=2)
        acc = acc + jnp.where(col == 0, 0.0, left)
        acc = acc + jnp.where(col == W - 1, 0.0, right)

    o_ref[...] = acc.astype(o_ref.dtype)


def depthwise_laplacian(x, *, target_block_bytes=4 * 1024 * 1024):
    """x: (N, C, H, W) -> same-shape 5-point Laplacian with zero padding.

    Equivalent to the PyTorch depthwise Conv2d with fixed weights
    [[0,1,0],[1,-4,1],[0,1,0]], padding='same', stride 1, groups=C, no bias.
    """
    N, C, H, W = x.shape
    nc = N * C
    hw = H * W
    itemsize = jnp.dtype(x.dtype).itemsize
    vmem_limit = _vmem_limit_bytes()

    # Minimum flattened block is min(nc, 8) channel rows of H*W lanes each.
    flat_min_bytes = min(nc, 8) * hw * itemsize
    # TODO(synk): H < 8 with an enormous W*itemsize could exceed VMEM on the
    # flattened path; such degenerate planes are not row-tiled here.
    use_flat = (flat_min_bytes <= target_block_bytes) or H < 8

    if use_flat:
        # ---- whole-plane path: (nc, H*W), contiguous channel slabs --------
        x2 = x.reshape(nc, hw)                          # metadata-only
        row_bytes = hw * itemsize
        if nc <= 8:
            tc = nc                                     # block dim == full dim
        else:
            cap = max(8, target_block_bytes // row_bytes)
            if nc >= 16:                                # >=2 blocks (v7x megacore)
                cap = min(cap, _round_up(pl.cdiv(nc, 2), 8))
            tc = _best_tile(nc, cap)
        grid = (pl.cdiv(nc, tc),)
        spec = pl.BlockSpec((tc, hw), lambda c: (c, 0))
        out = pl.pallas_call(
            functools.partial(_flat_laplacian_kernel, H=H, W=W),
            out_shape=jax.ShapeDtypeStruct((nc, hw), x.dtype),
            grid_spec=pltpu.PrefetchScalarGridSpec(
                num_scalar_prefetch=0, grid=grid,
                in_specs=[spec], out_specs=spec),
            compiler_params=pltpu.CompilerParams(
                dimension_semantics=("parallel",),
                vmem_limit_bytes=vmem_limit),
        )(x2)
        return out.reshape(N, C, H, W)

    # ---- large-plane path: (nc, H, W), row-tiled with 1-row halos ---------
    x3 = x.reshape(nc, H, W)                            # metadata-only
    th_cap = max(1, target_block_bytes // (W * itemsize))
    th = H if th_cap >= H else _best_tile(H, th_cap)
    nrb = pl.cdiv(H, th)                                # row blocks
    nrb8 = pl.cdiv(H, 8)                                # 8-row halo slabs
    thb = max(th // 8, 1)                               # exact when nrb > 1

    main_spec = pl.BlockSpec((1, th, W), lambda c, r: (c, r, 0))
    top_spec = pl.BlockSpec(
        (1, 8, W), lambda c, r: (c, jnp.maximum(r * thb - 1, 0), 0))
    bot_spec = pl.BlockSpec(
        (1, 8, W), lambda c, r: (c, jnp.minimum((r + 1) * thb, nrb8 - 1), 0))

    out = pl.pallas_call(
        functools.partial(_rows_laplacian_kernel, H=H, W=W),
        out_shape=jax.ShapeDtypeStruct((nc, H, W), x.dtype),
        grid_spec=pltpu.PrefetchScalarGridSpec(
            num_scalar_prefetch=0, grid=(nc, nrb),
            in_specs=[main_spec, top_spec, bot_spec],
            out_specs=main_spec),
        compiler_params=pltpu.CompilerParams(
            dimension_semantics=("parallel", "parallel"),
            vmem_limit_bytes=vmem_limit),
    )(x3, x3, x3)
    return out.reshape(N, C, H, W)


def _reference(x):
    # Pure-JAX reference: zero-padded 5-point stencil (== PyTorch depthwise
    # conv with the fixed Laplacian weight).
    xp = jnp.pad(x, ((0, 0), (0, 0), (1, 1), (1, 1)))
    return (xp[:, :, :-2, 1:-1] + xp[:, :, 2:, 1:-1] +
            xp[:, :, 1:-1, :-2] + xp[:, :, 1:-1, 2:] - 4.0 * x)


if __name__ == "__main__":
    key = jax.random.PRNGKey(0)
    k1, k2, k3 = jax.random.split(key, 3)

    # 1) main (flattened, whole-plane) path, f32.
    x1 = jax.random.normal(k1, (2, 4, 16, 16), dtype=jnp.float32)
    out1 = jax.block_until_ready(jax.jit(depthwise_laplacian)(x1))
    np.testing.assert_allclose(np.asarray(out1), np.asarray(_reference(x1)),
                               rtol=1e-5, atol=1e-5)

    # 2) large-plane (row-tiled, halo) path, forced via a tiny block budget
    #    so th < H and the halo splicing is exercised.
    x2 = jax.random.normal(k2, (2, 2, 32, 16), dtype=jnp.float32)
    out2 = jax.block_until_ready(
        depthwise_laplacian(x2, target_block_bytes=1024))
    np.testing.assert_allclose(np.asarray(out2), np.asarray(_reference(x2)),
                               rtol=1e-5, atol=1e-5)

    # 3) bf16 input: f32 accumulation in-kernel, cast only at the store.
    x3 = jax.random.normal(k3, (2, 4, 16, 16), dtype=jnp.bfloat16)
    out3 = jax.block_until_ready(jax.jit(depthwise_laplacian)(x3))
    ref3 = _reference(x3.astype(jnp.float32))
    np.testing.assert_allclose(np.asarray(out3).astype(np.float32),
                               np.asarray(ref3), rtol=2e-2, atol=2e-2)

    print("KERNEL_OK")
</pallas_src>

<mosaic_0001>
module attributes {stable_mosaic.version = 11 : i64} {
  func.func @_flat_laplacian_kernel(%arg0: i32, %arg1: memref<8x256xf32, #tpu.memory_space<vmem>>, %arg2: memref<8x256xf32, #tpu.memory_space<vmem>>) attributes {dimension_semantics = [#tpu.dimension_semantics<parallel>], iteration_bounds = array<i64: 1>, scalar_prefetch = 0 : i64, scratch_operands = 0 : i64, tpu.core_type = #tpu.core_type<tc>, window_params = [{transform_indices = @transform_0, window_bounds = array<i64: 8, 256>}, {transform_indices = @transform_1, window_bounds = array<i64: 8, 256>}]} {
    %c0 = arith.constant 0 : index
    %c0_0 = arith.constant 0 : index
    %0 = vector.load %arg1[%c0, %c0_0] : memref<8x256xf32, #tpu.memory_space<vmem>>, vector<8x256xf32>
    %1 = tpu.iota {dimensions = array<i32: 1>} : vector<8x256xi32>
    %cst = arith.constant -4.000000e+00 : f32
    %2 = vector.broadcast %cst : f32 to vector<8x256xf32>
    %3 = arith.mulf %2, %0 : vector<8x256xf32>
    %c16_i32 = arith.constant 16 : i32
    %4 = tpu.dynamic_rotate %0 by %c16_i32 dim 1 : vector<8x256xf32>, i32 -> vector<8x256xf32>
    %c240_i32 = arith.constant 240 : i32
    %5 = tpu.dynamic_rotate %0 by %c240_i32 dim 1 : vector<8x256xf32>, i32 -> vector<8x256xf32>
    %c16_i32_1 = arith.constant 16 : i32
    %6 = vector.broadcast %c16_i32_1 : i32 to vector<8x256xi32>
    %7 = arith.cmpi slt, %1, %6 : vector<8x256xi32>
    %cst_2 = arith.constant 0.000000e+00 : f32
    %8 = vector.broadcast %cst_2 : f32 to vector<8x256xf32>
    %9 = arith.select %7, %8, %4 : vector<8x256xi1>, vector<8x256xf32>
    %10 = arith.addf %3, %9 : vector<8x256xf32>
    %c240_i32_3 = arith.constant 240 : i32
    %11 = vector.broadcast %c240_i32_3 : i32 to vector<8x256xi32>
    %12 = arith.cmpi sge, %1, %11 : vector<8x256xi32>
    %cst_4 = arith.constant 0.000000e+00 : f32
    %13 = vector.broadcast %cst_4 : f32 to vector<8x256xf32>
    %14 = arith.select %12, %13, %5 : vector<8x256xi1>, vector<8x256xf32>
    %15 = arith.addf %10, %14 : vector<8x256xf32>
    %c15_i32 = arith.constant 15 : i32
    %16 = vector.broadcast %c15_i32 : i32 to vector<8x256xi32>
    %17 = arith.andi %1, %16 : vector<8x256xi32>
    %c1_i32 = arith.constant 1 : i32
    %18 = tpu.dynamic_rotate %0 by %c1_i32 dim 1 : vector<8x256xf32>, i32 -> vector<8x256xf32>
    %c255_i32 = arith.constant 255 : i32
    %19 = tpu.dynamic_rotate %0 by %c255_i32 dim 1 : vector<8x256xf32>, i32 -> vector<8x256xf32>
    %c0_i32 = arith.constant 0 : i32
    %20 = vector.broadcast %c0_i32 : i32 to vector<8x256xi32>
    %21 = arith.cmpi eq, %17, %20 : vector<8x256xi32>
    %cst_5 = arith.constant 0.000000e+00 : f32
    %22 = vector.broadcast %cst_5 : f32 to vector<8x256xf32>
    %23 = arith.select %21, %22, %18 : vector<8x256xi1>, vector<8x256xf32>
    %24 = arith.addf %15, %23 : vector<8x256xf32>
    %c15_i32_6 = arith.constant 15 : i32
    %25 = vector.broadcast %c15_i32_6 : i32 to vector<8x256xi32>
    %26 = arith.cmpi eq, %17, %25 : vector<8x256xi32>
    %cst_7 = arith.constant 0.000000e+00 : f32
    %27 = vector.broadcast %cst_7 : f32 to vector<8x256xf32>
    %28 = arith.select %26, %27, %19 : vector<8x256xi1>, vector<8x256xf32>
    %29 = arith.addf %24, %28 : vector<8x256xf32>
    %c0_8 = arith.constant 0 : index
    %c0_9 = arith.constant 0 : index
    %30 = vector.load %arg2[%c0_8, %c0_9] : memref<8x256xf32, #tpu.memory_space<vmem>>, vector<8x256xf32>
    tpu.vector_store %arg2[%c0_8, %c0_9], %29 {strides = array<i32>} : memref<8x256xf32, #tpu.memory_space<vmem>>, vector<8x256xf32>,
    return
  }
  func.func @transform_0(%arg0: i32) -> (i32, i32) {
    %c0_i32 = arith.constant 0 : i32
    %c0_i32_0 = arith.constant 0 : i32
    return %arg0, %c0_i32 : i32, i32
  }
  func.func @transform_1(%arg0: i32) -> (i32, i32) {
    %c0_i32 = arith.constant 0 : i32
    %c0_i32_0 = arith.constant 0 : i32
    return %arg0, %c0_i32 : i32, i32
  }
}

</mosaic_0001>

<bundles_post_ra>
// kernel: depthwise_laplacian.1
= control target key start
LH: loop header
LB: loop body
LE: loop exit
PB: predicated region body
PF: predicated region fallthrough
CT: control target
= control target key end

     0   :  { %s78_s8 = smov 112   ;;  %s79_s9 = smov 16   ;;  %v10_v2 = vlaneseq  ;;  %s112_s0 = inlined_call_operand.vmem [shape: f32[8,256], index: 0, kind: input, shape index: {}]   ;;  %s113_s1 = inlined_call_operand.vmem [shape: f32[8,256], index: 1, kind: output, shape index: {}]  }
   0x1   :  { %v8_v0 = vld [vmem:[%s112_s0] sm:$0xff]  ;;  %s80_s10 = smov 1   ;;  %v9_v1 = vld [vmem:[%s112_s0 + $0x8] sm:$0xff]  ;;  %s81_s13 = smov 127  }
   0x2   :  { %22 = vrot.lane.b32.xlu1 %v8_v0, %s78_s8  ;;  %15 = vrot.lane.b32.xlu0 %v8_v0, %s79_s9  ;;  %v11_v6 = vand.u32 127, %v10_v2  ;;  %v14_v8 = vmul.f32 -4.0, %v9_v1  ;;  %v13_v9 = vmul.f32 -4.0, %v8_v0 }
   0x3   :  { %42 = vrot.lane.b32.xlu2 %v8_v0, %s80_s10 }
   0x4   :  { %v12_v7 = vadd.s32 128, %v11_v6  ;;  %vm26_vm0 = vcmp.lt.s32.totalorder %v11_v6, 112  ;;  %vm19_vm1 = vcmp.lt.s32.totalorder %v11_v6, 16  ;;  %v40_v10 = vand.u32 15, %v11_v6 }
   0x5   :  { %vm46_vm3 = vcmp.lt.s32.totalorder %v11_v6, 1  ;;  %vm53_vm6 = vcmp.lt.s32.totalorder %v11_v6, 127 }
   0x6   :  { %vm35_vm2 = vcmp.ge.s32.totalorder %v12_v7, 240  ;;  %v41_v11 = vand.u32 15, %v12_v7  ;;  %vm99_vm4 = vcmp.eq.s32.totalorder %v40_v10, 0  ;;  %vm62_vm7 = vcmp.eq.s32.totalorder %v40_v10, 15 }
   0x8   :  { %vm57_vm5 = vcmp.eq.s32.totalorder %v41_v11, 0  ;;  %vm63_vm8 = vcmp.eq.s32.totalorder %v41_v11, 15 }
   0xa   :  { %24 = vrot.lane.b32.xlu1 %v9_v1, %s78_s8  ;;  %17 = vrot.lane.b32.xlu0 %v9_v1, %s79_s9 }
   0xb   :  { %44 = vrot.lane.b32.xlu2 %v9_v1, %s80_s10 }
  0x12   :  { %51 = vrot.lane.b32.xlu1 %v9_v1, %s81_s13  ;;  %49 = vrot.lane.b32.xlu0 %v8_v0, %s81_s13 }
  0x5d   :  { %v43_v3 = vpop.permute.xlu2 %42 }
  0x65   :  { %v45_v17 = vpop.permute.xlu2 %44 }
  0x66   :  { %v47_v24 = vsel %vm46_vm3, %v43_v3, %v45_v17  ;;  %v48_v25 = vsel %vm46_vm3, %v45_v17, %v43_v3 }
  0x67   :  { %v58_v28 = vsel %vm99_vm4, 0.0, %v48_v25  ;;  %v59_v29 = vsel %vm57_vm5, 0.0, %v47_v24 }
  0x74   :  { %v23_v4 = vpop.permute.xlu1 %22  ;;  %v16_v5 = vpop.permute.xlu0 %15 }
  0x7c   :  { %v25_v12 = vpop.permute.xlu1 %24  ;;  %v18_v13 = vpop.permute.xlu0 %17 }
  0x7d   :  { %v28_v14 = vsel %vm26_vm0, %v25_v12, %v23_v4  ;;  %v20_v15 = vsel %vm19_vm1, %v16_v5, %v18_v13  ;;  %v21_v16 = vsel %vm19_vm1, %v18_v13, %v16_v5  ;;  %v27_v23 = vsel %vm26_vm0, %v23_v4, %v25_v12 }
  0x7e   :  { %v37_v18 = vsel %vm35_vm2, 0.0, %v28_v14  ;;  %v30_v19 = vsel %vm19_vm1, 0.0, %v21_v16  ;;  %v33_v20 = vadd.f32 %v20_v15, %v14_v8 }
  0x7f   :  { %v32_v21 = vadd.f32 %v30_v19, %v13_v9 }
  0x80   :  { %v39_v27 = vadd.f32 %v37_v18, %v33_v20 }
  0x81   :  { %v38_v26 = vadd.f32 %v32_v21, %v27_v23 }
  0x82   :  { %v61_v32 = vadd.f32 %v59_v29, %v39_v27 }
  0x83   :  { %v60_v35 = vadd.f32 %v58_v28, %v38_v26 }
  0x84   :  { %v52_v30 = vpop.permute.xlu1 %51  ;;  %v50_v31 = vpop.permute.xlu0 %49 }
  0x85   :  { %v54_v33 = vsel %vm53_vm6, %v50_v31, %v52_v30  ;;  %v55_v34 = vsel %vm53_vm6, %v52_v30, %v50_v31 }
  0x86   :  { %v64_v36 = vsel %vm62_vm7, 0.0, %v54_v33  ;;  %v65_v37 = vsel %vm63_vm8, 0.0, %v55_v34 }
  0x87   :  { %v66_v38 = vadd.f32 %v64_v36, %v60_v35  ;;  %v67_v39 = vadd.f32 %v65_v37, %v61_v32 }
  0x89   :  { %68 = vst [vmem:[%s113_s1] sm:$0xff] %v66_v38 }
  0x8a   :  { %69 = vst [vmem:[%s113_s1 + $0x8] sm:$0xff] %v67_v39 }

</bundles_post_ra>
